<compile_context>
chip_gen: v5e
topology: v5e:2x2
jax: 0.10.0
libtpu: 0.0.40
codegen_flags: <defaults>
</compile_context>

<pallas_src>
import functools

import jax
import jax.numpy as jnp
from jax.experimental import pallas as pl
from jax.experimental.pallas import tpu as pltpu

LANES = 128
SUBLANES = 8
MAX_BLOCK_ROWS = 2048       # (2048, 128) f32 = 1 MiB per input block
NUM_PARTIALS = 2            # leading "parallel" axis (both TCs on v7x)


def _wbce_kernel(pred_ref, targ_ref, out_ref, *, weight_positive):
    i = pl.program_id(1)

    @pl.when(i == 0)
    def _():
        out_ref[...] = jnp.zeros_like(out_ref)

    p = pred_ref[...]
    t = targ_ref[...]

    # PyTorch F.binary_cross_entropy clamps each log term at -100.
    log_p = jnp.maximum(jnp.log(p), -100.0)
    log_1mp = jnp.maximum(jnp.log(1.0 - p), -100.0)
    loss = -(t * log_p + (1.0 - t) * log_1mp)

    # weight = 1 everywhere, weight_positive where target > 0
    w = jnp.where(t > 0.0, jnp.float32(weight_positive), jnp.float32(1.0))
    wl = loss * w
    # Padded tail elements (p=0, t=0) give exactly 0 loss, so no mask needed.

    # Fold the (block_rows, 128) tile into an (8, 128) vreg of partial sums
    # using plain VPU adds (layout-preserving reshape: (8,128) tiles intact).
    rows, cols = wl.shape
    out_ref[...] += wl.reshape(rows // SUBLANES, SUBLANES, cols).sum(axis=0)


def weighted_bce_loss(pred, target, weight_positive=2.0):
    """Scalar f32: mean of per-element weighted BCE (PyTorch semantics)."""
    assert pred.shape == target.shape
    n = pred.size  # static Python int

    pred_flat = pred.reshape(-1).astype(jnp.float32)
    targ_flat = target.reshape(-1).astype(jnp.float32)

    # Block sizing: up to MAX_BLOCK_ROWS rows of 128 lanes, multiple of 8 rows,
    # shrunk for small inputs so both "cores" get work without extra padding.
    rows_needed = pl.cdiv(n, LANES)
    block_rows = min(
        MAX_BLOCK_ROWS,
        pl.cdiv(rows_needed, SUBLANES * NUM_PARTIALS) * SUBLANES)
    rows_per_round = NUM_PARTIALS * block_rows
    rows_total = pl.cdiv(rows_needed, rows_per_round) * rows_per_round
    n_pad = rows_total * LANES

    if n_pad != n:
        # Zero padding contributes exactly 0 loss; only materialized if needed.
        pred_flat = jnp.pad(pred_flat, (0, n_pad - n))
        targ_flat = jnp.pad(targ_flat, (0, n_pad - n))

    pred2d = pred_flat.reshape(rows_total, LANES)
    targ2d = targ_flat.reshape(rows_total, LANES)

    steps = rows_total // rows_per_round   # row-blocks handled per "core"
    kernel = functools.partial(_wbce_kernel, weight_positive=weight_positive)

    partials = pl.pallas_call(
        kernel,
        out_shape=jax.ShapeDtypeStruct((NUM_PARTIALS * SUBLANES, LANES),
                                       jnp.float32),
        grid_spec=pltpu.PrefetchScalarGridSpec(
            num_scalar_prefetch=0,
            grid=(NUM_PARTIALS, steps),
            in_specs=[
                pl.BlockSpec((block_rows, LANES),
                             lambda c, i: (c * steps + i, 0)),
                pl.BlockSpec((block_rows, LANES),
                             lambda c, i: (c * steps + i, 0)),
            ],
            out_specs=pl.BlockSpec((SUBLANES, LANES), lambda c, i: (c, 0)),
        ),
        compiler_params=pltpu.CompilerParams(
            dimension_semantics=("parallel", "arbitrary")),
    )(pred2d, targ2d)

    # Final tiny reduction + mean over the true (unpadded) element count.
    return jnp.sum(partials) / jnp.float32(n)


if __name__ == "__main__":
    key = jax.random.PRNGKey(0)
    k1, k2 = jax.random.split(key)

    # NCHW, small shapes (e.g. adjacency-like tensor)
    shape = (2, 4, 16, 16)
    # pred must be a probability in (0, 1); target is a binary/soft label
    pred = jax.nn.sigmoid(jax.random.normal(k1, shape, dtype=jnp.float32))
    target = (jax.random.uniform(k2, shape) > 0.5).astype(jnp.float32)

    loss_fn = jax.jit(functools.partial(weighted_bce_loss, weight_positive=2.0))
    loss = loss_fn(pred, target)
    loss = jax.block_until_ready(loss)

    # pure-JAX reference (matches PyTorch F.binary_cross_entropy + weighting)
    log_p = jnp.maximum(jnp.log(pred), -100.0)
    log_1mp = jnp.maximum(jnp.log(1.0 - pred), -100.0)
    ref_loss = -(target * log_p + (1.0 - target) * log_1mp)
    ref_w = jnp.where(target > 0.0, 2.0, 1.0)
    ref = jnp.mean(ref_loss * ref_w)

    assert jnp.allclose(loss, ref, rtol=1e-5, atol=1e-6), (loss, ref)
    print("KERNEL_OK")
</pallas_src>

<mosaic_0001>
module attributes {stable_mosaic.version = 11 : i64} {
  func.func @_wbce_kernel(%arg0: i32, %arg1: i32, %arg2: memref<8x128xf32, #tpu.memory_space<vmem>>, %arg3: memref<8x128xf32, #tpu.memory_space<vmem>>, %arg4: memref<8x128xf32, #tpu.memory_space<vmem>>) attributes {dimension_semantics = [#tpu.dimension_semantics<parallel>, #tpu.dimension_semantics<arbitrary>], iteration_bounds = array<i64: 2, 1>, scalar_prefetch = 0 : i64, scratch_operands = 0 : i64, tpu.core_type = #tpu.core_type<tc>, window_params = [{transform_indices = @transform_0, window_bounds = array<i64: 8, 128>}, {transform_indices = @transform_1, window_bounds = array<i64: 8, 128>}, {transform_indices = @transform_2, window_bounds = array<i64: 8, 128>}]} {
    %c0_i32 = arith.constant 0 : i32
    %0 = arith.cmpi eq, %arg1, %c0_i32 : i32
    %1 = arith.extui %0 : i1 to i32
    %c0_i32_0 = arith.constant 0 : i32
    %2 = arith.cmpi ne, %1, %c0_i32_0 : i32
    scf.if %2 {
      %cst_16 = arith.constant 0.000000e+00 : f32
      %31 = vector.broadcast %cst_16 : f32 to vector<8x128xf32>
      %c0_17 = arith.constant 0 : index
      %c0_18 = arith.constant 0 : index
      %32 = vector.load %arg4[%c0_17, %c0_18] : memref<8x128xf32, #tpu.memory_space<vmem>>, vector<8x128xf32>
      tpu.vector_store %arg4[%c0_17, %c0_18], %31 {strides = array<i32>} : memref<8x128xf32, #tpu.memory_space<vmem>>, vector<8x128xf32>,
    } else {
    }
    %c0 = arith.constant 0 : index
    %c0_1 = arith.constant 0 : index
    %3 = vector.load %arg2[%c0, %c0_1] : memref<8x128xf32, #tpu.memory_space<vmem>>, vector<8x128xf32>
    %c0_2 = arith.constant 0 : index
    %c0_3 = arith.constant 0 : index
    %4 = vector.load %arg3[%c0_2, %c0_3] : memref<8x128xf32, #tpu.memory_space<vmem>>, vector<8x128xf32>
    %5 = math.log %3 : vector<8x128xf32>
    %cst = arith.constant -1.000000e+02 : f32
    %6 = vector.broadcast %cst : f32 to vector<8x128xf32>
    %7 = arith.maximumf %5, %6 : vector<8x128xf32>
    %cst_4 = arith.constant 1.000000e+00 : f32
    %8 = vector.broadcast %cst_4 : f32 to vector<8x128xf32>
    %9 = arith.subf %8, %3 : vector<8x128xf32>
    %10 = math.log %9 : vector<8x128xf32>
    %cst_5 = arith.constant -1.000000e+02 : f32
    %11 = vector.broadcast %cst_5 : f32 to vector<8x128xf32>
    %12 = arith.maximumf %10, %11 : vector<8x128xf32>
    %13 = arith.mulf %4, %7 : vector<8x128xf32>
    %cst_6 = arith.constant 1.000000e+00 : f32
    %14 = vector.broadcast %cst_6 : f32 to vector<8x128xf32>
    %15 = arith.subf %14, %4 : vector<8x128xf32>
    %16 = arith.mulf %15, %12 : vector<8x128xf32>
    %17 = arith.addf %13, %16 : vector<8x128xf32>
    %cst_7 = arith.constant 0.000000e+00 : f32
    %18 = vector.broadcast %cst_7 : f32 to vector<8x128xf32>
    %19 = arith.subf %18, %17 : vector<8x128xf32>
    %cst_8 = arith.constant 0.000000e+00 : f32
    %20 = vector.broadcast %cst_8 : f32 to vector<8x128xf32>
    %21 = arith.cmpf ogt, %4, %20 : vector<8x128xf32>
    %cst_9 = arith.constant 2.000000e+00 : f32
    %cst_10 = arith.constant 1.000000e+00 : f32
    %22 = vector.broadcast %cst_9 : f32 to vector<8x128xf32>
    %23 = vector.broadcast %cst_10 : f32 to vector<8x128xf32>
    %24 = arith.select %21, %22, %23 : vector<8x128xi1>, vector<8x128xf32>
    %25 = arith.mulf %19, %24 : vector<8x128xf32>
    %c0_11 = arith.constant 0 : index
    %c0_12 = arith.constant 0 : index
    %26 = vector.load %arg4[%c0_11, %c0_12] : memref<8x128xf32, #tpu.memory_space<vmem>>, vector<8x128xf32>
    %27 = vector.shape_cast %25 : vector<8x128xf32> to vector<1x8x128xf32>
    %cst_13 = arith.constant dense<0.000000e+00> : vector<8x128xf32>
    %28 = vector.multi_reduction <add>, %27, %cst_13 [0] : vector<1x8x128xf32> to vector<8x128xf32>
    %29 = arith.addf %26, %28 : vector<8x128xf32>
    %c0_14 = arith.constant 0 : index
    %c0_15 = arith.constant 0 : index
    %30 = vector.load %arg4[%c0_14, %c0_15] : memref<8x128xf32, #tpu.memory_space<vmem>>, vector<8x128xf32>
    tpu.vector_store %arg4[%c0_14, %c0_15], %29 {strides = array<i32>} : memref<8x128xf32, #tpu.memory_space<vmem>>, vector<8x128xf32>,
    return
  }
  func.func @transform_0(%arg0: i32, %arg1: i32) -> (i32, i32) {
    %c1_i32 = arith.constant 1 : i32
    %0 = arith.muli %arg0, %c1_i32 : i32
    %1 = arith.addi %0, %arg1 : i32
    %c0_i32 = arith.constant 0 : i32
    %c0_i32_0 = arith.constant 0 : i32
    return %1, %c0_i32 : i32, i32
  }
  func.func @transform_1(%arg0: i32, %arg1: i32) -> (i32, i32) {
    %c1_i32 = arith.constant 1 : i32
    %0 = arith.muli %arg0, %c1_i32 : i32
    %1 = arith.addi %0, %arg1 : i32
    %c0_i32 = arith.constant 0 : i32
    %c0_i32_0 = arith.constant 0 : i32
    return %1, %c0_i32 : i32, i32
  }
  func.func @transform_2(%arg0: i32, %arg1: i32) -> (i32, i32) {
    %c0_i32 = arith.constant 0 : i32
    %c0_i32_0 = arith.constant 0 : i32
    return %arg0, %c0_i32 : i32, i32
  }
}

</mosaic_0001>

<bundles_post_ra>
// kernel: weighted_bce_loss.1
= control target key start
LH: loop header
LB: loop body
LE: loop exit
PB: predicated region body
PF: predicated region fallthrough
CT: control target
= control target key end

     0   :  { %s361_s9 = smov 0   ;;  %s363_s10 = smov 0   ;;  %s397_s0 = inlined_call_operand.vmem [shape: f32[16,128], index: 0, kind: input, shape index: {}]   ;;  %s398_s1 = inlined_call_operand.vmem [shape: f32[16,128], index: 1, kind: input, shape index: {}]   ;;  %s399_s2 = inlined_call_operand.vmem [shape: f32[16,128], index: 2, kind: output, shape index: {}]  }
   0x1   :  { %s365_s11 = smov 0  }
   0x2 LB: > { %s24_s12 = sadd.s32 1, %s339_s10  ;;  %p285_p0 = scmp.ge.s32.totalorder %s343_s11, 1  ;;  %s343_s11 = sphi %s365_s11, %s12_s11   ;;  %s339_s10 = sphi %s363_s10, %s401_s10   ;;  %s335_s9 = sphi %s361_s9, %s400_s9  }
   0x3   : > { %p26_p1 = scmp.ge.s32.totalorder %s24_s12, 2  ;;  %p140_p2 = scmp.lt.s32.totalorder %s343_s11, 3 }
   0x5   : > { %s403_s12 = smov (%p26_p1, %s24_s12), 0  ;;  %p141_p3 = pnand %p285_p0, %p140_p2 }
   0x6   : > { %p167_p4 = scmp.lt.s32.totalorder (!%p141_p3), %s335_s9, 1 }
   0x7   : > { %144 = sbr.rel (%p141_p3) target bundleno = 38 (0x26), region = 28 }
   0xc   : > { %s405_s9 = smov (!%p167_p4, %s335_s9), 1  ;;  %v345_v13 = vmov 1.0  }
   0xd   : > { %s286_s13 = sshll.u32 %s405_s9, 3 }
   0xe   : > { %s170_s16 = scalar_lea.vmem %s397_s0, %s286_s13  ;;  %s176_s19 = scalar_lea.vmem %s398_s1, %s286_s13 }
   0xf   : > { %v187_v0 = vld [vmem:[%s170_s16] sm:$0xff]  ;;  %s181_s22 = scalar_lea.vmem %s399_s2, %s286_s13 }
  0x10   : > { %317 = vlog2.f32 %v187_v0  ;;  %v192_v1 = vsub.f32 1.0, %v187_v0  ;;  %v188_v3 = vld [vmem:[%s176_s19] sm:$0xff] }
  0x11   : > { %v197_v8 = vsub.f32 1.0, %v188_v3  ;;  %vm201_vm0 = vcmp.gt.f32.partialorder %v188_v3, 0.0 }
  0x12   : > { %319 = vlog2.f32 %v192_v1  ;;  %v202_v14 = vsel %vm201_vm0, 2.0, %v345_v13 }
  0x16   : > { %v318_v2 = vpop.eup %317 }
  0x17   : > { %v190_v4 = vmul.f32 0.6931472, %v318_v2 }
  0x18   : > { %v320_v5 = vpop.eup %319 }
  0x19   : > { %v191_v6 = vmax.f32 %v190_v4, -100.0  ;;  %v194_v7 = vmul.f32 0.6931472, %v320_v5 }
  0x1b   : > { %v195_v9 = vmax.f32 %v194_v7, -100.0  ;;  %v196_v10 = vmul.f32 %v191_v6, %v188_v3 }
  0x1d   : > { %v198_v11 = vmul.f32 %v197_v8, %v195_v9 }
  0x1f   : > { %v199_v12 = vadd.f32 %v198_v11, %v196_v10 }
  0x21   : > { %v200_v15 = vsub.f32 0.0, %v199_v12 }
  0x23   : > { %v203_v16 = vmul.f32 %v202_v14, %v200_v15 }
  0x25   : > { %207 = vst [vmem:[%s181_s22] sm:$0xff] %v203_v16 }
  0x26 PF: > { %s12_s11 = sadd.s32 1, %s343_s11   ;;  %s400_s9 = smov %s339_s10 }
  0x27   : > { %p9_p5 = scmp.ge.s32.totalorder %s12_s11, 4   ;;  %s401_s10 = smov %s403_s12 }
  0x29   :  { %11 = sbr.rel (!%p9_p5) target bundleno = 2 (0x2), region = 65 }

</bundles_post_ra>
